<compile_context>
chip_gen: v7x
topology: tpu7x:2x2x1
jax: 0.10.0
libtpu: 0.0.40
codegen_flags: <defaults>
</compile_context>

<pallas_src>
import jax
import jax.numpy as jnp
from jax.experimental import pallas as pl
from jax.experimental.pallas import tpu as pltpu

BB_HEAVY_ATOM_CA = 1
AA_UNK = 21

_LANE = 128
_SUBLANE = 8
# ~2 MiB of HBM written per grid step (review: target 1-4 MiB/step).
_TARGET_OUT_BYTES_PER_STEP = 2 * 1024 * 1024
_MAX_ROW_TILE = 8192


def _round_up(x, m):
    return (x + m - 1) // m * m


def _residue_embed_kernel(ids_ref, table_ref, o_ref):
    """One grid step.

    ids_ref:   (TM, P)    int32  sentinel-coded token ids (id == A selects the
                                  all-zero row -> implements the CA mask).
    table_ref: (A+1, D)   f32    folded relu(E@W1+b1)@W2+b2 table + zero row.
    o_ref:     (TM, P*D)  f32    P tokens packed per lane-dense output row.
    """
    ids = ids_ref[...]                                   # (TM, P)
    tm, p_slots = ids.shape
    n_rows, d = table_ref.shape
    table = table_ref[...]                               # tiny, stays resident
    iota = jax.lax.broadcasted_iota(jnp.int32, (tm, n_rows), 1)
    # Static unroll over the P packed tokens: each is a one-hot row-gather
    # expressed as a tiny-K MXU matmul (exact: weights are 0/1).
    for p in range(p_slots):
        onehot = (iota == ids[:, p:p + 1]).astype(jnp.float32)   # (TM, A+1)
        feat = jnp.dot(onehot, table, preferred_element_type=jnp.float32)
        o_ref[:, p * d:(p + 1) * d] = feat


def ez_residue_embedding(aa, res_nb, pos_atoms, mask_atoms, params,
                         structure_mask=None, sequence_mask=None):
    """JAX/Pallas equivalent of EZResidueEmbedding.forward.

    aa:          (N, L)                   int32
    res_nb:      (N, L)                   int32   (unused by reference fwd)
    pos_atoms:   (N, L, max_num_atoms, 3) float   (unused by reference fwd)
    mask_atoms:  (N, L, max_num_atoms)    bool
    returns:     (N, L, feat_dim)         float32
    """
    del res_nb, pos_atoms, structure_mask  # not used by the reference forward

    N, L = aa.shape
    M = N * L
    emb = params["aatype_embed"].astype(jnp.float32)
    w1 = params["w1"].astype(jnp.float32)
    b1 = params["b1"].astype(jnp.float32)
    w2 = params["w2"].astype(jnp.float32)
    b2 = params["b2"].astype(jnp.float32)
    A, D = emb.shape

    # ---- Algebraic fold (wrapper-side, tiny 22xDxD work).
    table = jnp.maximum(emb @ w1 + b1, 0.0) @ w2 + b2            # (A, D)
    # Sentinel all-zero row: tokens whose CA atom is absent pick it, which is
    # exactly `out * mask_residue` for a boolean mask, with no mask input.
    table = jnp.concatenate([table, jnp.zeros((1, D), jnp.float32)], axis=0)
    sentinel = A                                                  # zero row id

    # ---- Choose the token packing P so the output row width W = P*D is an
    # exact multiple of 128 (lane-dense stores, no zero columns).
    if D % _LANE == 0:
        base_pack, lane_pad = 1, 0
    elif _LANE % D == 0:
        base_pack, lane_pad = _LANE // D, 0
    else:
        # Rare fallback (D neither divides nor is divided by 128): lane-pad the
        # feature dim; padded zero columns are sliced off in the wrapper.
        base_pack, lane_pad = 1, _round_up(D, _LANE) - D

    if lane_pad:
        table = jnp.pad(table, ((0, 0), (0, lane_pad)))
        P = 1
    else:
        P = base_pack
        if M % base_pack == 0:
            # Opportunistically pack more tokens per row (only if it keeps
            # M % P == 0, i.e. no output padding/slice) so the int32 id input
            # rows get denser for the DMA.  Output width capped at 4096 lanes.
            for f in (32, 16, 8, 4, 2, 1):
                cand = base_pack * f
                if cand <= 128 and cand * D <= 4096 and M % cand == 0:
                    P = cand
                    break
    W = P * (D + lane_pad)

    # ---- Sentinel-coded token ids (sequence mask -> UNK, CA mask -> zeros).
    if sequence_mask is not None:
        aa = jnp.where(sequence_mask, aa, jnp.full_like(aa, AA_UNK))
    ca_mask = jnp.asarray(mask_atoms)[:, :, BB_HEAVY_ATOM_CA].astype(bool)
    ids = jnp.where(ca_mask, aa.astype(jnp.int32), jnp.int32(sentinel))

    M_pad = _round_up(M, P)            # == M whenever M % P == 0 (common case)
    M_rows = M_pad // P

    # ---- Row tile: ~TARGET bytes of output per grid step, multiple of 8.
    if M_rows <= _SUBLANE:
        tm = M_rows                    # block == full array dims (legal)
    else:
        tm = _round_up(max(_TARGET_OUT_BYTES_PER_STEP // (W * 4), 1), _SUBLANE)
        tm = min(tm, _MAX_ROW_TILE, _round_up(M_rows, _SUBLANE))
    grid_rows = pl.cdiv(M_rows, tm)

    # Pad only the tiny id input so every input block is fully in-bounds; the
    # output keeps its exact shape and Pallas masks the tail block's OOB rows.
    ids_flat = ids.reshape(M)
    tokens_needed = grid_rows * tm * P
    if tokens_needed != M:
        ids_flat = jnp.pad(ids_flat, (0, tokens_needed - M),
                           constant_values=sentinel)
    ids_rows = ids_flat.reshape(grid_rows * tm, P)

    n_table_rows, table_cols = table.shape
    cost = pl.CostEstimate(
        flops=int(2 * M * n_table_rows * table_cols),
        transcendentals=0,
        bytes_accessed=int(M_rows * W * 4 + tokens_needed * 4 + table.size * 4),
    )

    out = pl.pallas_call(
        _residue_embed_kernel,
        out_shape=jax.ShapeDtypeStruct((M_rows, W), jnp.float32),
        grid_spec=pltpu.PrefetchScalarGridSpec(
            num_scalar_prefetch=0,
            grid=(grid_rows,),
            in_specs=[
                pl.BlockSpec((tm, P), lambda i: (i, 0)),               # ids
                pl.BlockSpec((n_table_rows, table_cols),
                             lambda i: (0, 0)),                         # table
            ],
            out_specs=pl.BlockSpec((tm, W), lambda i: (i, 0)),
        ),
        compiler_params=pltpu.CompilerParams(
            dimension_semantics=("parallel",),
            vmem_limit_bytes=32 * 1024 * 1024),
        cost_estimate=cost,
    )(ids_rows, table)

    if lane_pad:
        out2d = out[:, :D]                     # fallback path only
    else:
        out2d = out.reshape(M_pad, D)          # free: identical row-major layout
    if M_pad != M:
        out2d = out2d[:M]                      # only if M % P != 0 (rare)
    return out2d.reshape(N, L, D)


def init_params(key, feat_dim, max_aa_types=22):
    k_emb, k_w1, k_b1, k_w2, k_b2 = jax.random.split(key, 5)
    bound = 1.0 / jnp.sqrt(jnp.float32(feat_dim))
    return {
        "aatype_embed": jax.random.normal(k_emb, (max_aa_types, feat_dim),
                                          dtype=jnp.float32),
        # Stored transposed vs. PyTorch (x @ W convention).
        "w1": jax.random.uniform(k_w1, (feat_dim, feat_dim), jnp.float32,
                                 -bound, bound),
        "b1": jax.random.uniform(k_b1, (1, feat_dim), jnp.float32,
                                 -bound, bound),
        "w2": jax.random.uniform(k_w2, (feat_dim, feat_dim), jnp.float32,
                                 -bound, bound),
        "b2": jax.random.uniform(k_b2, (1, feat_dim), jnp.float32,
                                 -bound, bound),
    }


if __name__ == "__main__":
    key = jax.random.PRNGKey(0)
    N, L = 2, 8
    feat_dim = 32
    max_num_atoms = 15
    max_aa_types = 22

    k_params, k_aa, k_mask, k_seq, k_pos = jax.random.split(key, 5)
    params = init_params(k_params, feat_dim, max_aa_types)

    aa = jax.random.randint(k_aa, (N, L), 0, max_aa_types, dtype=jnp.int32)
    res_nb = jnp.broadcast_to(jnp.arange(L, dtype=jnp.int32), (N, L))
    pos_atoms = jax.random.normal(k_pos, (N, L, max_num_atoms, 3),
                                  dtype=jnp.float32)
    mask_atoms = jax.random.bernoulli(k_mask, 0.9, (N, L, max_num_atoms))
    sequence_mask = jax.random.bernoulli(k_seq, 0.8, (N, L))

    out = ez_residue_embedding(aa, res_nb, pos_atoms, mask_atoms, params,
                               sequence_mask=sequence_mask)
    jax.block_until_ready(out)

    # Pure-JAX reference (un-folded, layer-by-layer path).
    aa_ref = jnp.where(sequence_mask, aa, jnp.full_like(aa, AA_UNK))
    feat_ref = params["aatype_embed"][aa_ref]
    h_ref = jnp.maximum(feat_ref @ params["w1"] + params["b1"][0], 0.0)
    out_ref = h_ref @ params["w2"] + params["b2"][0]
    out_ref = out_ref * mask_atoms[:, :, BB_HEAVY_ATOM_CA].astype(
        jnp.float32)[:, :, None]
    assert out.shape == (N, L, feat_dim)
    assert jnp.allclose(out, out_ref, atol=1e-5, rtol=1e-5)

    print("KERNEL_OK")
</pallas_src>

<mosaic_0001>
module attributes {stable_mosaic.version = 11 : i64} {
  func.func @_residue_embed_kernel(%arg0: i32, %arg1: memref<1x16xi32, #tpu.memory_space<vmem>>, %arg2: memref<23x32xf32, #tpu.memory_space<vmem>>, %arg3: memref<1x512xf32, #tpu.memory_space<vmem>>) attributes {dimension_semantics = [#tpu.dimension_semantics<parallel>], iteration_bounds = array<i64: 1>, scalar_prefetch = 0 : i64, scratch_operands = 0 : i64, tpu.core_type = #tpu.core_type<tc>, window_params = [{transform_indices = @transform_0, window_bounds = array<i64: 1, 16>}, {pipeline_mode = #tpu.pipeline_mode<synchronous>, transform_indices = @transform_1, window_bounds = array<i64: 23, 32>}, {transform_indices = @transform_2, window_bounds = array<i64: 1, 512>}]} {
    %c0 = arith.constant 0 : index
    %c0_0 = arith.constant 0 : index
    %0 = vector.load %arg1[%c0, %c0_0] : memref<1x16xi32, #tpu.memory_space<vmem>>, vector<1x16xi32>
    %c0_1 = arith.constant 0 : index
    %c0_2 = arith.constant 0 : index
    %1 = vector.load %arg2[%c0_1, %c0_2] : memref<23x32xf32, #tpu.memory_space<vmem>>, vector<23x32xf32>
    %2 = tpu.iota {dimensions = array<i32: 1>} : vector<1x23xi32>
    %3 = vector.extract_strided_slice %0 {offsets = [0, 0], sizes = [1, 1], strides = [1, 1]} : vector<1x16xi32> to vector<1x1xi32>
    %4 = vector.broadcast %3 : vector<1x1xi32> to vector<1x23xi32>
    %5 = arith.cmpi eq, %2, %4 : vector<1x23xi32>
    %6 = arith.extui %5 : vector<1x23xi1> to vector<1x23xi32>
    %7 = arith.sitofp %6 : vector<1x23xi32> to vector<1x23xf32>
    %cst = arith.constant dense<0.000000e+00> : vector<1x32xf32>
    %8 = tpu.matmul %7, %1, %cst {dimension_numbers = #tpu.dot_dimension_numbers<[1], [0], [0], [1], [0, 0, 1, 1], [], []>} : vector<1x23xf32>, vector<23x32xf32>, vector<1x32xf32> -> vector<1x32xf32>
    %c0_3 = arith.constant 0 : index
    %c0_4 = arith.constant 0 : index
    %9 = vector.load %arg3[%c0_3, %c0_4] : memref<1x512xf32, #tpu.memory_space<vmem>>, vector<1x32xf32>
    tpu.vector_store %arg3[%c0_3, %c0_4], %8 {strides = array<i32>} : memref<1x512xf32, #tpu.memory_space<vmem>>, vector<1x32xf32>,
    %10 = vector.extract_strided_slice %0 {offsets = [0, 1], sizes = [1, 1], strides = [1, 1]} : vector<1x16xi32> to vector<1x1xi32>
    %11 = vector.broadcast %10 : vector<1x1xi32> to vector<1x23xi32>
    %12 = arith.cmpi eq, %2, %11 : vector<1x23xi32>
    %13 = arith.extui %12 : vector<1x23xi1> to vector<1x23xi32>
    %14 = arith.sitofp %13 : vector<1x23xi32> to vector<1x23xf32>
    %cst_5 = arith.constant dense<0.000000e+00> : vector<1x32xf32>
    %15 = tpu.matmul %14, %1, %cst_5 {dimension_numbers = #tpu.dot_dimension_numbers<[1], [0], [0], [1], [0, 0, 1, 1], [], []>} : vector<1x23xf32>, vector<23x32xf32>, vector<1x32xf32> -> vector<1x32xf32>
    %c0_6 = arith.constant 0 : index
    %c32 = arith.constant 32 : index
    %16 = vector.load %arg3[%c0_6, %c32] : memref<1x512xf32, #tpu.memory_space<vmem>>, vector<1x32xf32>
    tpu.vector_store %arg3[%c0_6, %c32], %15 {strides = array<i32>} : memref<1x512xf32, #tpu.memory_space<vmem>>, vector<1x32xf32>,
    %17 = vector.extract_strided_slice %0 {offsets = [0, 2], sizes = [1, 1], strides = [1, 1]} : vector<1x16xi32> to vector<1x1xi32>
    %18 = vector.broadcast %17 : vector<1x1xi32> to vector<1x23xi32>
    %19 = arith.cmpi eq, %2, %18 : vector<1x23xi32>
    %20 = arith.extui %19 : vector<1x23xi1> to vector<1x23xi32>
    %21 = arith.sitofp %20 : vector<1x23xi32> to vector<1x23xf32>
    %cst_7 = arith.constant dense<0.000000e+00> : vector<1x32xf32>
    %22 = tpu.matmul %21, %1, %cst_7 {dimension_numbers = #tpu.dot_dimension_numbers<[1], [0], [0], [1], [0, 0, 1, 1], [], []>} : vector<1x23xf32>, vector<23x32xf32>, vector<1x32xf32> -> vector<1x32xf32>
    %c0_8 = arith.constant 0 : index
    %c64 = arith.constant 64 : index
    %23 = vector.load %arg3[%c0_8, %c64] : memref<1x512xf32, #tpu.memory_space<vmem>>, vector<1x32xf32>
    tpu.vector_store %arg3[%c0_8, %c64], %22 {strides = array<i32>} : memref<1x512xf32, #tpu.memory_space<vmem>>, vector<1x32xf32>,
    %24 = vector.extract_strided_slice %0 {offsets = [0, 3], sizes = [1, 1], strides = [1, 1]} : vector<1x16xi32> to vector<1x1xi32>
    %25 = vector.broadcast %24 : vector<1x1xi32> to vector<1x23xi32>
    %26 = arith.cmpi eq, %2, %25 : vector<1x23xi32>
    %27 = arith.extui %26 : vector<1x23xi1> to vector<1x23xi32>
    %28 = arith.sitofp %27 : vector<1x23xi32> to vector<1x23xf32>
    %cst_9 = arith.constant dense<0.000000e+00> : vector<1x32xf32>
    %29 = tpu.matmul %28, %1, %cst_9 {dimension_numbers = #tpu.dot_dimension_numbers<[1], [0], [0], [1], [0, 0, 1, 1], [], []>} : vector<1x23xf32>, vector<23x32xf32>, vector<1x32xf32> -> vector<1x32xf32>
    %c0_10 = arith.constant 0 : index
    %c96 = arith.constant 96 : index
    %30 = vector.load %arg3[%c0_10, %c96] : memref<1x512xf32, #tpu.memory_space<vmem>>, vector<1x32xf32>
    tpu.vector_store %arg3[%c0_10, %c96], %29 {strides = array<i32>} : memref<1x512xf32, #tpu.memory_space<vmem>>, vector<1x32xf32>,
    %31 = vector.extract_strided_slice %0 {offsets = [0, 4], sizes = [1, 1], strides = [1, 1]} : vector<1x16xi32> to vector<1x1xi32>
    %32 = vector.broadcast %31 : vector<1x1xi32> to vector<1x23xi32>
    %33 = arith.cmpi eq, %2, %32 : vector<1x23xi32>
    %34 = arith.extui %33 : vector<1x23xi1> to vector<1x23xi32>
    %35 = arith.sitofp %34 : vector<1x23xi32> to vector<1x23xf32>
    %cst_11 = arith.constant dense<0.000000e+00> : vector<1x32xf32>
    %36 = tpu.matmul %35, %1, %cst_11 {dimension_numbers = #tpu.dot_dimension_numbers<[1], [0], [0], [1], [0, 0, 1, 1], [], []>} : vector<1x23xf32>, vector<23x32xf32>, vector<1x32xf32> -> vector<1x32xf32>
    %c0_12 = arith.constant 0 : index
    %c128 = arith.constant 128 : index
    %37 = vector.load %arg3[%c0_12, %c128] : memref<1x512xf32, #tpu.memory_space<vmem>>, vector<1x32xf32>
    tpu.vector_store %arg3[%c0_12, %c128], %36 {strides = array<i32>} : memref<1x512xf32, #tpu.memory_space<vmem>>, vector<1x32xf32>,
    %38 = vector.extract_strided_slice %0 {offsets = [0, 5], sizes = [1, 1], strides = [1, 1]} : vector<1x16xi32> to vector<1x1xi32>
    %39 = vector.broadcast %38 : vector<1x1xi32> to vector<1x23xi32>
    %40 = arith.cmpi eq, %2, %39 : vector<1x23xi32>
    %41 = arith.extui %40 : vector<1x23xi1> to vector<1x23xi32>
    %42 = arith.sitofp %41 : vector<1x23xi32> to vector<1x23xf32>
    %cst_13 = arith.constant dense<0.000000e+00> : vector<1x32xf32>
    %43 = tpu.matmul %42, %1, %cst_13 {dimension_numbers = #tpu.dot_dimension_numbers<[1], [0], [0], [1], [0, 0, 1, 1], [], []>} : vector<1x23xf32>, vector<23x32xf32>, vector<1x32xf32> -> vector<1x32xf32>
    %c0_14 = arith.constant 0 : index
    %c160 = arith.constant 160 : index
    %44 = vector.load %arg3[%c0_14, %c160] : memref<1x512xf32, #tpu.memory_space<vmem>>, vector<1x32xf32>
    tpu.vector_store %arg3[%c0_14, %c160], %43 {strides = array<i32>} : memref<1x512xf32, #tpu.memory_space<vmem>>, vector<1x32xf32>,
    %45 = vector.extract_strided_slice %0 {offsets = [0, 6], sizes = [1, 1], strides = [1, 1]} : vector<1x16xi32> to vector<1x1xi32>
    %46 = vector.broadcast %45 : vector<1x1xi32> to vector<1x23xi32>
    %47 = arith.cmpi eq, %2, %46 : vector<1x23xi32>
    %48 = arith.extui %47 : vector<1x23xi1> to vector<1x23xi32>
    %49 = arith.sitofp %48 : vector<1x23xi32> to vector<1x23xf32>
    %cst_15 = arith.constant dense<0.000000e+00> : vector<1x32xf32>
    %50 = tpu.matmul %49, %1, %cst_15 {dimension_numbers = #tpu.dot_dimension_numbers<[1], [0], [0], [1], [0, 0, 1, 1], [], []>} : vector<1x23xf32>, vector<23x32xf32>, vector<1x32xf32> -> vector<1x32xf32>
    %c0_16 = arith.constant 0 : index
    %c192 = arith.constant 192 : index
    %51 = vector.load %arg3[%c0_16, %c192] : memref<1x512xf32, #tpu.memory_space<vmem>>, vector<1x32xf32>
    tpu.vector_store %arg3[%c0_16, %c192], %50 {strides = array<i32>} : memref<1x512xf32, #tpu.memory_space<vmem>>, vector<1x32xf32>,
    %52 = vector.extract_strided_slice %0 {offsets = [0, 7], sizes = [1, 1], strides = [1, 1]} : vector<1x16xi32> to vector<1x1xi32>
    %53 = vector.broadcast %52 : vector<1x1xi32> to vector<1x23xi32>
    %54 = arith.cmpi eq, %2, %53 : vector<1x23xi32>
    %55 = arith.extui %54 : vector<1x23xi1> to vector<1x23xi32>
    %56 = arith.sitofp %55 : vector<1x23xi32> to vector<1x23xf32>
    %cst_17 = arith.constant dense<0.000000e+00> : vector<1x32xf32>
    %57 = tpu.matmul %56, %1, %cst_17 {dimension_numbers = #tpu.dot_dimension_numbers<[1], [0], [0], [1], [0, 0, 1, 1], [], []>} : vector<1x23xf32>, vector<23x32xf32>, vector<1x32xf32> -> vector<1x32xf32>
    %c0_18 = arith.constant 0 : index
    %c224 = arith.constant 224 : index
    %58 = vector.load %arg3[%c0_18, %c224] : memref<1x512xf32, #tpu.memory_space<vmem>>, vector<1x32xf32>
    tpu.vector_store %arg3[%c0_18, %c224], %57 {strides = array<i32>} : memref<1x512xf32, #tpu.memory_space<vmem>>, vector<1x32xf32>,
    %59 = vector.extract_strided_slice %0 {offsets = [0, 8], sizes = [1, 1], strides = [1, 1]} : vector<1x16xi32> to vector<1x1xi32>
    %60 = vector.broadcast %59 : vector<1x1xi32> to vector<1x23xi32>
    %61 = arith.cmpi eq, %2, %60 : vector<1x23xi32>
    %62 = arith.extui %61 : vector<1x23xi1> to vector<1x23xi32>
    %63 = arith.sitofp %62 : vector<1x23xi32> to vector<1x23xf32>
    %cst_19 = arith.constant dense<0.000000e+00> : vector<1x32xf32>
    %64 = tpu.matmul %63, %1, %cst_19 {dimension_numbers = #tpu.dot_dimension_numbers<[1], [0], [0], [1], [0, 0, 1, 1], [], []>} : vector<1x23xf32>, vector<23x32xf32>, vector<1x32xf32> -> vector<1x32xf32>
    %c0_20 = arith.constant 0 : index
    %c256 = arith.constant 256 : index
    %65 = vector.load %arg3[%c0_20, %c256] : memref<1x512xf32, #tpu.memory_space<vmem>>, vector<1x32xf32>
    tpu.vector_store %arg3[%c0_20, %c256], %64 {strides = array<i32>} : memref<1x512xf32, #tpu.memory_space<vmem>>, vector<1x32xf32>,
    %66 = vector.extract_strided_slice %0 {offsets = [0, 9], sizes = [1, 1], strides = [1, 1]} : vector<1x16xi32> to vector<1x1xi32>
    %67 = vector.broadcast %66 : vector<1x1xi32> to vector<1x23xi32>
    %68 = arith.cmpi eq, %2, %67 : vector<1x23xi32>
    %69 = arith.extui %68 : vector<1x23xi1> to vector<1x23xi32>
    %70 = arith.sitofp %69 : vector<1x23xi32> to vector<1x23xf32>
    %cst_21 = arith.constant dense<0.000000e+00> : vector<1x32xf32>
    %71 = tpu.matmul %70, %1, %cst_21 {dimension_numbers = #tpu.dot_dimension_numbers<[1], [0], [0], [1], [0, 0, 1, 1], [], []>} : vector<1x23xf32>, vector<23x32xf32>, vector<1x32xf32> -> vector<1x32xf32>
    %c0_22 = arith.constant 0 : index
    %c288 = arith.constant 288 : index
    %72 = vector.load %arg3[%c0_22, %c288] : memref<1x512xf32, #tpu.memory_space<vmem>>, vector<1x32xf32>
    tpu.vector_store %arg3[%c0_22, %c288], %71 {strides = array<i32>} : memref<1x512xf32, #tpu.memory_space<vmem>>, vector<1x32xf32>,
    %73 = vector.extract_strided_slice %0 {offsets = [0, 10], sizes = [1, 1], strides = [1, 1]} : vector<1x16xi32> to vector<1x1xi32>
    %74 = vector.broadcast %73 : vector<1x1xi32> to vector<1x23xi32>
    %75 = arith.cmpi eq, %2, %74 : vector<1x23xi32>
    %76 = arith.extui %75 : vector<1x23xi1> to vector<1x23xi32>
    %77 = arith.sitofp %76 : vector<1x23xi32> to vector<1x23xf32>
    %cst_23 = arith.constant dense<0.000000e+00> : vector<1x32xf32>
    %78 = tpu.matmul %77, %1, %cst_23 {dimension_numbers = #tpu.dot_dimension_numbers<[1], [0], [0], [1], [0, 0, 1, 1], [], []>} : vector<1x23xf32>, vector<23x32xf32>, vector<1x32xf32> -> vector<1x32xf32>
    %c0_24 = arith.constant 0 : index
    %c320 = arith.constant 320 : index
    %79 = vector.load %arg3[%c0_24, %c320] : memref<1x512xf32, #tpu.memory_space<vmem>>, vector<1x32xf32>
    tpu.vector_store %arg3[%c0_24, %c320], %78 {strides = array<i32>} : memref<1x512xf32, #tpu.memory_space<vmem>>, vector<1x32xf32>,
    %80 = vector.extract_strided_slice %0 {offsets = [0, 11], sizes = [1, 1], strides = [1, 1]} : vector<1x16xi32> to vector<1x1xi32>
    %81 = vector.broadcast %80 : vector<1x1xi32> to vector<1x23xi32>
    %82 = arith.cmpi eq, %2, %81 : vector<1x23xi32>
    %83 = arith.extui %82 : vector<1x23xi1> to vector<1x23xi32>
    %84 = arith.sitofp %83 : vector<1x23xi32> to vector<1x23xf32>
    %cst_25 = arith.constant dense<0.000000e+00> : vector<1x32xf32>
    %85 = tpu.matmul %84, %1, %cst_25 {dimension_numbers = #tpu.dot_dimension_numbers<[1], [0], [0], [1], [0, 0, 1, 1], [], []>} : vector<1x23xf32>, vector<23x32xf32>, vector<1x32xf32> -> vector<1x32xf32>
    %c0_26 = arith.constant 0 : index
    %c352 = arith.constant 352 : index
    %86 = vector.load %arg3[%c0_26, %c352] : memref<1x512xf32, #tpu.memory_space<vmem>>, vector<1x32xf32>
    tpu.vector_store %arg3[%c0_26, %c352], %85 {strides = array<i32>} : memref<1x512xf32, #tpu.memory_space<vmem>>, vector<1x32xf32>,
    %87 = vector.extract_strided_slice %0 {offsets = [0, 12], sizes = [1, 1], strides = [1, 1]} : vector<1x16xi32> to vector<1x1xi32>
    %88 = vector.broadcast %87 : vector<1x1xi32> to vector<1x23xi32>
    %89 = arith.cmpi eq, %2, %88 : vector<1x23xi32>
    %90 = arith.extui %89 : vector<1x23xi1> to vector<1x23xi32>
    %91 = arith.sitofp %90 : vector<1x23xi32> to vector<1x23xf32>
    %cst_27 = arith.constant dense<0.000000e+00> : vector<1x32xf32>
    %92 = tpu.matmul %91, %1, %cst_27 {dimension_numbers = #tpu.dot_dimension_numbers<[1], [0], [0], [1], [0, 0, 1, 1], [], []>} : vector<1x23xf32>, vector<23x32xf32>, vector<1x32xf32> -> vector<1x32xf32>
    %c0_28 = arith.constant 0 : index
    %c384 = arith.constant 384 : index
    %93 = vector.load %arg3[%c0_28, %c384] : memref<1x512xf32, #tpu.memory_space<vmem>>, vector<1x32xf32>
    tpu.vector_store %arg3[%c0_28, %c384], %92 {strides = array<i32>} : memref<1x512xf32, #tpu.memory_space<vmem>>, vector<1x32xf32>,
    %94 = vector.extract_strided_slice %0 {offsets = [0, 13], sizes = [1, 1], strides = [1, 1]} : vector<1x16xi32> to vector<1x1xi32>
    %95 = vector.broadcast %94 : vector<1x1xi32> to vector<1x23xi32>
    %96 = arith.cmpi eq, %2, %95 : vector<1x23xi32>
    %97 = arith.extui %96 : vector<1x23xi1> to vector<1x23xi32>
    %98 = arith.sitofp %97 : vector<1x23xi32> to vector<1x23xf32>
    %cst_29 = arith.constant dense<0.000000e+00> : vector<1x32xf32>
    %99 = tpu.matmul %98, %1, %cst_29 {dimension_numbers = #tpu.dot_dimension_numbers<[1], [0], [0], [1], [0, 0, 1, 1], [], []>} : vector<1x23xf32>, vector<23x32xf32>, vector<1x32xf32> -> vector<1x32xf32>
    %c0_30 = arith.constant 0 : index
    %c416 = arith.constant 416 : index
    %100 = vector.load %arg3[%c0_30, %c416] : memref<1x512xf32, #tpu.memory_space<vmem>>, vector<1x32xf32>
    tpu.vector_store %arg3[%c0_30, %c416], %99 {strides = array<i32>} : memref<1x512xf32, #tpu.memory_space<vmem>>, vector<1x32xf32>,
    %101 = vector.extract_strided_slice %0 {offsets = [0, 14], sizes = [1, 1], strides = [1, 1]} : vector<1x16xi32> to vector<1x1xi32>
    %102 = vector.broadcast %101 : vector<1x1xi32> to vector<1x23xi32>
    %103 = arith.cmpi eq, %2, %102 : vector<1x23xi32>
    %104 = arith.extui %103 : vector<1x23xi1> to vector<1x23xi32>
    %105 = arith.sitofp %104 : vector<1x23xi32> to vector<1x23xf32>
    %cst_31 = arith.constant dense<0.000000e+00> : vector<1x32xf32>
    %106 = tpu.matmul %105, %1, %cst_31 {dimension_numbers = #tpu.dot_dimension_numbers<[1], [0], [0], [1], [0, 0, 1, 1], [], []>} : vector<1x23xf32>, vector<23x32xf32>, vector<1x32xf32> -> vector<1x32xf32>
    %c0_32 = arith.constant 0 : index
    %c448 = arith.constant 448 : index
    %107 = vector.load %arg3[%c0_32, %c448] : memref<1x512xf32, #tpu.memory_space<vmem>>, vector<1x32xf32>
    tpu.vector_store %arg3[%c0_32, %c448], %106 {strides = array<i32>} : memref<1x512xf32, #tpu.memory_space<vmem>>, vector<1x32xf32>,
    %108 = vector.extract_strided_slice %0 {offsets = [0, 15], sizes = [1, 1], strides = [1, 1]} : vector<1x16xi32> to vector<1x1xi32>
    %109 = vector.broadcast %108 : vector<1x1xi32> to vector<1x23xi32>
    %110 = arith.cmpi eq, %2, %109 : vector<1x23xi32>
    %111 = arith.extui %110 : vector<1x23xi1> to vector<1x23xi32>
    %112 = arith.sitofp %111 : vector<1x23xi32> to vector<1x23xf32>
    %cst_33 = arith.constant dense<0.000000e+00> : vector<1x32xf32>
    %113 = tpu.matmul %112, %1, %cst_33 {dimension_numbers = #tpu.dot_dimension_numbers<[1], [0], [0], [1], [0, 0, 1, 1], [], []>} : vector<1x23xf32>, vector<23x32xf32>, vector<1x32xf32> -> vector<1x32xf32>
    %c0_34 = arith.constant 0 : index
    %c480 = arith.constant 480 : index
    %114 = vector.load %arg3[%c0_34, %c480] : memref<1x512xf32, #tpu.memory_space<vmem>>, vector<1x32xf32>
    tpu.vector_store %arg3[%c0_34, %c480], %113 {strides = array<i32>} : memref<1x512xf32, #tpu.memory_space<vmem>>, vector<1x32xf32>,
    return
  }
  func.func @transform_0(%arg0: i32) -> (i32, i32) {
    %c0_i32 = arith.constant 0 : i32
    %c0_i32_0 = arith.constant 0 : i32
    return %arg0, %c0_i32 : i32, i32
  }
  func.func @transform_1(%arg0: i32) -> (i32, i32) {
    %c0_i32 = arith.constant 0 : i32
    %c0_i32_0 = arith.constant 0 : i32
    %c0_i32_1 = arith.constant 0 : i32
    return %c0_i32, %c0_i32_0 : i32, i32
  }
  func.func @transform_2(%arg0: i32) -> (i32, i32) {
    %c0_i32 = arith.constant 0 : i32
    %c0_i32_0 = arith.constant 0 : i32
    return %arg0, %c0_i32 : i32, i32
  }
}

</mosaic_0001>

<bundles_post_ra>
// kernel: tpu_custom_call.1
= control target key start
LH: loop header
LB: loop body
LE: loop exit
PB: predicated region body
PF: predicated region fallthrough
CT: control target
= control target key end

     0   :  { %7 = vsyncpa [#allocation3], 0  ;;  %s2428_s0 = inlined_call_operand.hbm [shape: s32[1,16], index: 0, kind: input, shape index: {}]   ;;  %s2429_s1 = inlined_call_operand.hbm [shape: f32[23,32], index: 1, kind: input, shape index: {}]   ;;  %s2430_s2 = inlined_call_operand.hbm [shape: f32[1,512], index: 2, kind: output, shape index: {}]  }
   0x1   :  { %8 = vsyncpa [#allocation6], 0 }
   0x2   :  { %9 = vsyncpa [#allocation4], 0  ;;  %s2059_s9 = smov [#allocation2]   ;;  %s2060_s11 = smov [#allocation5]  }
   0x3   :  { %s16_s10 = sshll.u32 %s2059_s9, 4  ;;  %s25_s12 = sshll.u32 %s2060_s11, 4  ;;  %s17_s10 = int_to_ptr.vmem [resolvable:$true] %s16_s10  ;;  %s2102_s12 = int_to_ptr.vmem [resolvable:$true] %s25_s12 }
   0x4   :  { %s1987_s15 = scalar_lea.hbm %s2428_s0, 16 }
   0x5   :  { %p1988_p0 = scmp.ne.s32.totalorder %s2428_s0, %s1987_s15  ;;  %p1991_p1 = scmp.lt.u32.totalorder %s1987_s15, %s2428_s0 }
   0x7   :  { %p1993_p2 = pnand %p1991_p1, %p1988_p0 }
   0x9   :  { %1996 = shalt.err (!%p1993_p2)
}
   0xa   :  { %s1997_s20 = scalar_lea.vmem %s17_s10, 16  ;;  %s2001_s21 = scalar_lea.vmem %s17_s10, 32 }
   0xb   :  { %p1998_p3 = scmp.ne.s32.totalorder %s17_s10, %s1997_s20  ;;  %p2002_p4 = scmp.lt.s32.totalorder %s17_s10, %s17_s10 }
   0xc   :  { %p2003_p5 = scmp.lt.s32.totalorder %s2001_s21, %s1997_s20 }
   0xe   :  { %p2004_p6 = por %p2003_p5, %p2002_p4 }
  0x10   :  { %p2005_p7 = pnand %p2004_p6, %p1998_p3 }
  0x12   :  { %2008 = shalt.err (!%p2005_p7)
}
  0x13   :  { %19 = dma.hbm_to_vmem [thread:$0]  %s2428_s0, 16, %s17_s10, [#allocation3]  }
  0x14   :  { %s2009_s26 = scalar_lea.hbm %s2429_s1, 384 }
  0x15   :  { %p2010_p8 = scmp.ne.s32.totalorder %s2429_s1, %s2009_s26  ;;  %p2013_p9 = scmp.lt.u32.totalorder %s2009_s26, %s2429_s1 }
  0x17   :  { %p2015_p10 = pnand %p2013_p9, %p2010_p8 }
  0x19   :  { %2018 = shalt.err (!%p2015_p10)
}
  0x1a   :  { %s2019_s3 = scalar_lea.vmem %s2102_s12, 384  ;;  %p2024_p12 = scmp.lt.s32.totalorder %s2102_s12, %s2102_s12 }
  0x1b   :  { %p2020_p11 = scmp.ne.s32.totalorder %s2102_s12, %s2019_s3  ;;  %p2025_p13 = scmp.lt.s32.totalorder %s2019_s3, %s2019_s3 }
  0x1d   :  { %p2026_p0 = por %p2025_p13, %p2024_p12 }
  0x1f   :  { %p2027_p1 = pnand %p2026_p0, %p2020_p11 }
  0x21   :  { %2030 = shalt.err (!%p2027_p1)
}
  0x22   :  { %s2061_s0 = smov 128   ;;  %s2062_s4 = smov 8  }
  0x23   :  { %31 = dma.hbm_to_vmem [thread:$0]  %s2429_s1, 384, %s2102_s12, [#allocation6], %s2061_s0, %s2061_s0, %s2062_s4  }
  0x24   :  { %2053 = dma.done.wait [#allocation3], 16  }
  0x25   :  { %2054 = vsyncadd [#allocation3], 4294967280 }
  0x26   :  { %2055 = dma.done.wait [#allocation6], 384  }
  0x27   :  { %2056 = vsyncadd [#allocation6], 4294966912  ;;  %v2063_v0 = vmov 2   ;;  %v2064_v1 = vmov 0   ;;  %v2065_v2 = vmov 0.0|0.0   ;;  %v39_v4 = vld [vmem:[#allocation5] sm:$0xff]  ;;  %v42_v23 = vlaneseq }
  0x28   :  { %1972 = vset.pattern.permute.xlu1 %v2063_v0  ;;  %1970 = vset.pattern.permute.xlu0 %v2064_v1  ;;  %v38_v3 = vld [vmem:[#allocation2] sm:$0x1]  ;;  %v40_v5 = vld [vmem:[#allocation5 + $0x8] sm:$0xff]  ;;  %v2066_v7 = vmov 0.0   ;;  %v2140_v8 = vld [vmem:[#allocation5 + $0x10] sm:$0x7f] }
  0x29   :  { %1894 = vmatprep.subr.bf16.mxu0 %v2065_v2  ;;  %1897 = vmatprep.subr.bf16.mxu1 %v2065_v2  ;;  %v2135_v6 = vpack.c.bf16 %v40_v5, %v39_v4  ;;  %vm58_vm0 = vcmask 1046528   ;;  %vm2067_vm1 = vmmov 0   ;;  %v2068_v9 = vmov 3   ;;  %s2083_s1 = smov 32   ;;  %s2084_s7 = smov 64  }
  0x2a   :  { %243 = vperm.xlu1 %1972, %v38_v3   ;;  %45 = vperm.xlu0 %1970, %v38_v3   ;;  %v2069_v10 = vmov 1   ;;  %v2070_v11 = vmov 4   ;;  %v2071_v12 = vmov 5   ;;  %v2072_v13 = vmov 6   ;;  %s2085_s8 = smov 96   ;;  %s2086_s9 = smov [#allocation7]  }
  0x2b   :  { %1896 = vmatpush3.bf16.msra.mxu0 %v2135_v6  ;;  %1899 = vmatpush3.bf16.msra.mxu1 %v2135_v6  ;;  %v2073_v14 = vmov 8   ;;  %v2074_v15 = vmov 7   ;;  %v2075_v16 = vmov 11   ;;  %v2076_v17 = vmov 9   ;;  %s1628_s10 = sshll.u32 %s2086_s9, 4  ;;  %s1629_s10 = int_to_ptr.vmem [resolvable:$true] %s1628_s10 }
  0x2c   :  { %1754 = vmatprep.subr.mxu0 %v2066_v7  ;;  %1756 = vmatprep.mubr.msk.f32.mxu0 %vm2067_vm1, %v2066_v7  ;;  %v2077_v18 = vmov 14   ;;  %v2078_v19 = vmov 10   ;;  %v2079_v20 = vmov 15   ;;  %v2080_v21 = vmov 12   ;;  %s2031_s11 = scalar_lea.vmem %s1629_s10, 64  ;;  %p2036_p3 = scmp.lt.s32.totalorder %s1629_s10, %s1629_s10 }
  0x2d   :  { %1763 = vmatprep.subr.mxu1 %v2066_v7  ;;  %1765 = vmatprep.mubr.msk.f32.mxu1 %vm2067_vm1, %v2066_v7  ;;  %v2081_v22 = vmov 13   ;;  %v2154_v24 = vshrl.u32 %v42_v23, 7  ;;  %v2160_v26 = vand.u32 127, %v42_v23  ;;  %vm54_vm2 = vcmask 187392   ;;  %p2032_p2 = scmp.ne.s32.totalorder %s1629_s10, %s2031_s11  ;;  %p2037_p4 = scmp.lt.s32.totalorder %s2031_s11, %s2031_s11 }
  0x2e   :  { %1973 = vset.pattern.permute.xlu1 %v2068_v9  ;;  %1971 = vset.pattern.permute.xlu0 %v2069_v10 }
  0x2f   :  { %348 = vperm.xlu1 %1973, %v38_v3   ;;  %138 = vperm.xlu0 %1971, %v38_v3   ;;  %v2157_v25 = vsub.s32 0, %v2154_v24  ;;  %p2038_p5 = por %p2037_p4, %p2036_p3 }
  0x30   :  { %1755 = vmatpush3.msk.msra.mxu0 %vm58_vm0, %v2140_v8  ;;  %1764 = vmatpush3.msk.msra.mxu1 %vm58_vm0, %v2140_v8 }
  0x31   :  { %1900 = vmatprep.subr.bf16.mxu0 %v2065_v2  ;;  %1903 = vmatprep.subr.bf16.mxu1 %v2065_v2  ;;  %p2039_p6 = pnand %p2038_p5, %p2032_p2 }
  0x33   :  { %1974 = vset.pattern.permute.xlu1 %v2070_v11  ;;  %1975 = vset.pattern.permute.xlu0 %v2071_v12 }
  0x34   :  { %453 = vperm.xlu1 %1974, %v38_v3   ;;  %537 = vperm.xlu0 %1975, %v38_v3  }
  0x38   :  { %1976 = vset.pattern.permute.xlu1 %v2072_v13  ;;  %1978 = vset.pattern.permute.xlu0 %v2073_v14 }
  0x39   :  { %639 = vperm.xlu1 %1976, %v38_v3   ;;  %843 = vperm.xlu0 %1978, %v38_v3  }
  0x3d   :  { %1977 = vset.pattern.permute.xlu1 %v2074_v15  ;;  %1981 = vset.pattern.permute.xlu0 %v2075_v16 }
  0x3e   :  { %741 = vperm.xlu1 %1977, %v38_v3   ;;  %1131 = vperm.xlu0 %1981, %v38_v3  }
  0x42   :  { %1979 = vset.pattern.permute.xlu1 %v2076_v17  ;;  %1984 = vset.pattern.permute.xlu0 %v2077_v18 }
  0x43   :  { %927 = vperm.xlu1 %1979, %v38_v3   ;;  %1419 = vperm.xlu0 %1984, %v38_v3  }
  0x47   :  { %1980 = vset.pattern.permute.xlu1 %v2078_v19  ;;  %1986 = vset.pattern.permute.xlu0 %v2079_v20 }
  0x48   :  { %1029 = vperm.xlu1 %1980, %v38_v3  }
  0x4c   :  { %1982 = vset.pattern.permute.xlu1 %v2080_v21 }
  0x4d   :  { %1233 = vperm.xlu1 %1982, %v38_v3  }
  0x51   :  { %1983 = vset.pattern.permute.xlu1 %v2081_v22 }
  0x52   :  { %1317 = vperm.xlu1 %1983, %v38_v3  }
  0x56   :  { %1985 = vset.pattern.permute.xlu1 %v2079_v20 }
  0x57   :  { %1521 = vperm.xlu1 %1985, %v38_v3  }
  0xa9   :  { %v46_v27 = vpop.permute.xlu0 %45  ;;  %v244_v28 = vpop.permute.xlu1 %243 }
  0xaa   :  { %v50_v29 = vrot.slane %v46_v27, %v2157_v25  ;;  %v248_v30 = vrot.slane %v244_v28, %v2157_v25 }
  0xac   :  { %vm51_vm3 = vcmp.eq.s32.totalorder %v2160_v26, %v50_v29  ;;  %vm249_vm4 = vcmp.eq.s32.totalorder %v2160_v26, %v248_v30 }
  0xad   :  { %v1638_v31 = vsel %vm51_vm3, 1.0, %v2066_v7  ;;  %v1644_v37 = vsel %vm249_vm4, 1.0, %v2066_v7 }
  0xae   :  { %1757 = vmatmul.mubr.msk.f32.vlgmr.msra.gmra.mrb[0].mxu0 %vm54_vm2, %v1638_v31  ;;  %v139_v32 = vpop.permute.xlu0 %138  ;;  %v349_v33 = vpop.permute.xlu1 %348 }
  0xaf   :  { %1902 = vmatpush3.bf16.msra.mxu0 %v2135_v6  ;;  %v143_v34 = vrot.slane %v139_v32, %v2157_v25  ;;  %1774 = vmatprep.mubr.msk.f32.mxu0 %vm2067_vm1, %v2066_v7  ;;  %v353_v35 = vrot.slane %v349_v33, %v2157_v25 }
  0xb0   :  { %1772 = vmatprep.subr.mxu0 %v2066_v7 }
  0xb1   :  { %vm144_vm5 = vcmp.eq.s32.totalorder %v2160_v26, %v143_v34  ;;  %vm354_vm6 = vcmp.eq.s32.totalorder %v2160_v26, %v353_v35 }
  0xb2   :  { %v1641_v36 = vsel %vm144_vm5, 1.0, %v2066_v7  ;;  %v1647_v42 = vsel %vm354_vm6, 1.0, %v2066_v7 }
  0xb3   :  { %1773 = vmatpush3.msk.msra.mxu0 %vm58_vm0, %v2140_v8  ;;  %1766 = vmatmul.mubr.msk.f32.vlgmr.msra.gmra.mrb[0].mxu1 %vm54_vm2, %v1641_v36  ;;  %v454_v38 = vpop.permute.xlu1 %453  ;;  %v538_v39 = vpop.permute.xlu0 %537 }
  0xb4   :  { %1775 = vmatmul.mubr.msk.f32.vlgmr.msra.gmra.mrb[2].mxu0 %vm54_vm2, %v1644_v37  ;;  %1905 = vmatpush3.bf16.msra.mxu1 %v2135_v6  ;;  %v458_v40 = vrot.slane %v454_v38, %v2157_v25  ;;  %v542_v41 = vrot.slane %v538_v39, %v2157_v25 }
  0xb5   :  { %1906 = vmatprep.subr.bf16.mxu0 %v2065_v2  ;;  %1781 = vmatprep.subr.mxu1 %v2066_v7 }
  0xb6   :  { %vm459_vm7 = vcmp.eq.s32.totalorder %v2160_v26, %v458_v40  ;;  %1908 = vmatpush3.bf16.msra.mxu0 %v2135_v6  ;;  %1783 = vmatprep.mubr.msk.f32.mxu1 %vm2067_vm1, %v2066_v7  ;;  %vm543_vm8 = vcmp.eq.s32.totalorder %v2160_v26, %v542_v41 }
  0xb7   :  { %1790 = vmatprep.subr.mxu0 %v2066_v7  ;;  %1792 = vmatprep.mubr.msk.f32.mxu0 %vm2067_vm1, %v2066_v7  ;;  %v1650_v43 = vsel %vm459_vm7, 1.0, %v2066_v7  ;;  %v1653_v47 = vsel %vm543_vm8, 1.0, %v2066_v7  ;;  %vm343_vm7 = vcmp.ge.s32.totalorder %v42_v23, 64  ;;  %vm344_vm8 = vcmp.lt.s32.totalorder %v42_v23, 96 }
  0xb8   :  { %1782 = vmatpush3.msk.msra.mxu1 %vm58_vm0, %v2140_v8  ;;  %v640_v44 = vpop.permute.xlu1 %639  ;;  %v844_v46 = vpop.permute.xlu0 %843 }
  0xb9   :  { %1784 = vmatmul.mubr.msk.f32.vlgmr.msra.gmra.mrb[2].mxu1 %vm54_vm2, %v1647_v42  ;;  %1909 = vmatprep.subr.bf16.mxu1 %v2065_v2  ;;  %v644_v45 = vrot.slane %v640_v44, %v2157_v25  ;;  %v848_v49 = vrot.slane %v844_v46, %v2157_v25 }
  0xba   :  { %1791 = vmatpush3.msk.msra.mxu0 %vm58_vm0, %v2140_v8  ;;  %1911 = vmatpush3.bf16.msra.mxu1 %v2135_v6 }
  0xbb   :  { %1793 = vmatmul.mubr.msk.f32.vlgmr.msra.gmra.mrb[4].mxu0 %vm54_vm2, %v1650_v43  ;;  %1912 = vmatprep.subr.bf16.mxu0 %v2065_v2  ;;  %vm645_vm9 = vcmp.eq.s32.totalorder %v2160_v26, %v644_v45  ;;  %vm849_vm11 = vcmp.eq.s32.totalorder %v2160_v26, %v848_v49 }
  0xbc   :  { %1914 = vmatpush3.bf16.msra.mxu0 %v2135_v6  ;;  %1799 = vmatprep.subr.mxu1 %v2066_v7  ;;  %v1656_v51 = vsel %vm645_vm9, 1.0, %v2066_v7  ;;  %v1662_v55 = vsel %vm849_vm11, 1.0, %v2066_v7  ;;  %vm2384_vm9 = vmand %vm343_vm7, %vm344_vm8  ;;  %vm449_vm11 = vcmp.lt.s32.totalorder %v42_v23, 128 }
  0xbd   :  { %1801 = vmatprep.mubr.msk.f32.mxu1 %vm2067_vm1, %v2066_v7  ;;  %1808 = vmatprep.subr.mxu0 %v2066_v7  ;;  %v742_v48 = vpop.permute.xlu1 %741  ;;  %v1132_v56 = vpop.permute.xlu0 %1131 }
  0xbe   :  { %1800 = vmatpush3.msk.msra.mxu1 %vm58_vm0, %v2140_v8  ;;  %v746_v50 = vrot.slane %v742_v48, %v2157_v25  ;;  %1810 = vmatprep.mubr.msk.f32.mxu0 %vm2067_vm1, %v2066_v7  ;;  %v1136_v58 = vrot.slane %v1132_v56, %v2157_v25 }
  0xbf   :  { %1802 = vmatmul.mubr.msk.f32.vlgmr.msra.gmra.mrb[4].mxu1 %vm54_vm2, %v1653_v47  ;;  %1915 = vmatprep.subr.bf16.mxu1 %v2065_v2 }
  0xc0   :  { %1809 = vmatpush3.msk.msra.mxu0 %vm58_vm0, %v2140_v8  ;;  %1917 = vmatpush3.bf16.msra.mxu1 %v2135_v6  ;;  %vm747_vm10 = vcmp.eq.s32.totalorder %v2160_v26, %v746_v50  ;;  %vm1137_vm14 = vcmp.eq.s32.totalorder %v2160_v26, %v1136_v58 }
  0xc1   :  { %1811 = vmatmul.mubr.msk.f32.vlgmr.msra.gmra.mrb[6].mxu0 %vm54_vm2, %v1656_v51  ;;  %1918 = vmatprep.subr.bf16.mxu0 %v2065_v2  ;;  %v1659_v54 = vsel %vm747_vm10, 1.0, %v2066_v7  ;;  %v1671_v1 = vsel %vm1137_vm14, 1.0, %v2066_v7  ;;  %vm448_vm10 = vcmp.ge.s32.totalorder %v42_v23, 96 }
  0xc2   :  { %1920 = vmatpush3.bf16.msra.mxu0 %v2135_v6  ;;  %1817 = vmatprep.subr.mxu1 %v2066_v7  ;;  %v928_v52 = vpop.permute.xlu1 %927  ;;  %v1420_v0 = vpop.permute.xlu0 %1419 }
  0xc3   :  { %v932_v53 = vrot.slane %v928_v52, %v2157_v25  ;;  %1819 = vmatprep.mubr.msk.f32.mxu1 %vm2067_vm1, %v2066_v7  ;;  %1826 = vmatprep.subr.mxu0 %v2066_v7  ;;  %v1424_v4 = vrot.slane %v1420_v0, %v2157_v25 }
  0xc4   :  { %1818 = vmatpush3.msk.msra.mxu1 %vm58_vm0, %v2140_v8  ;;  %1828 = vmatprep.mubr.msk.f32.mxu0 %vm2067_vm1, %v2066_v7 }
  0xc5   :  { %1820 = vmatmul.mubr.msk.f32.vlgmr.msra.gmra.mrb[6].mxu1 %vm54_vm2, %v1659_v54  ;;  %1921 = vmatprep.subr.bf16.mxu1 %v2065_v2  ;;  %vm933_vm12 = vcmp.eq.s32.totalorder %v2160_v26, %v932_v53  ;;  %vm1425_vm4 = vcmp.eq.s32.totalorder %v2160_v26, %v1424_v4 }
  0xc6   :  { %1827 = vmatpush3.msk.msra.mxu0 %vm58_vm0, %v2140_v8  ;;  %1923 = vmatpush3.bf16.msra.mxu1 %v2135_v6  ;;  %v1665_v60 = vsel %vm933_vm12, 1.0, %v2066_v7  ;;  %v1680_v12 = vsel %vm1425_vm4, 1.0, %v2066_v7  ;;  %vm2392_vm12 = vmand %vm448_vm10, %vm449_vm11 }
  0xc7   :  { %1924 = vmatprep.subr.bf16.mxu0 %v2065_v2  ;;  %1829 = vmatmul.mubr.msk.f32.vlgmr.msra.gmra.mrb[8].mxu0 %vm54_vm2, %v1662_v55  ;;  %v1030_v57 = vpop.permute.xlu1 %1029 }
  0xc8   :  { %1926 = vmatpush3.bf16.msra.mxu0 %v2135_v6  ;;  %v1034_v59 = vrot.slane %v1030_v57, %v2157_v25  ;;  %1835 = vmatprep.subr.mxu1 %v2066_v7 }
  0xc9   :  { %1837 = vmatprep.mubr.msk.f32.mxu1 %vm2067_vm1, %v2066_v7  ;;  %1844 = vmatprep.subr.mxu0 %v2066_v7 }
  0xca   :  { %vm1035_vm13 = vcmp.eq.s32.totalorder %v2160_v26, %v1034_v59  ;;  %1836 = vmatpush3.msk.msra.mxu1 %vm58_vm0, %v2140_v8  ;;  %1846 = vmatprep.mubr.msk.f32.mxu0 %vm2067_vm1, %v2066_v7 }
  0xcb   :  { %v1668_v61 = vsel %vm1035_vm13, 1.0, %v2066_v7  ;;  %1838 = vmatmul.mubr.msk.f32.vlgmr.msra.gmra.mrb[8].mxu1 %vm54_vm2, %v1665_v60  ;;  %1927 = vmatprep.subr.bf16.mxu1 %v2065_v2 }
  0xcc   :  { %1845 = vmatpush3.msk.msra.mxu0 %vm58_vm0, %v2140_v8  ;;  %1929 = vmatpush3.bf16.msra.mxu1 %v2135_v6  ;;  %v1234_v62 = vpop.permute.xlu1 %1233 }
  0xcd   :  { %1930 = vmatprep.subr.bf16.mxu0 %v2065_v2  ;;  %v1238_v63 = vrot.slane %v1234_v62, %v2157_v25  ;;  %1847 = vmatmul.mubr.msk.f32.vlgmr.msra.gmra.mrb[10].mxu0 %vm54_vm2, %v1668_v61 }
  0xce   :  { %1932 = vmatpush3.bf16.msra.mxu0 %v2135_v6  ;;  %1853 = vmatprep.subr.mxu1 %v2066_v7 }
  0xcf   :  { %vm1239_vm15 = vcmp.eq.s32.totalorder %v2160_v26, %v1238_v63  ;;  %1855 = vmatprep.mubr.msk.f32.mxu1 %vm2067_vm1, %v2066_v7  ;;  %1862 = vmatprep.subr.mxu0 %v2066_v7 }
  0xd0   :  { %v1674_v3 = vsel %vm1239_vm15, 1.0, %v2066_v7  ;;  %1854 = vmatpush3.msk.msra.mxu1 %vm58_vm0, %v2140_v8  ;;  %1864 = vmatprep.mubr.msk.f32.mxu0 %vm2067_vm1, %v2066_v7 }
  0xd1   :  { %1856 = vmatmul.mubr.msk.f32.vlgmr.msra.gmra.mrb[10].mxu1 %vm54_vm2, %v1671_v1  ;;  %1933 = vmatprep.subr.bf16.mxu1 %v2065_v2  ;;  %v1318_v5 = vpop.permute.xlu1 %1317 }
  0xd2   :  { %1863 = vmatpush3.msk.msra.mxu0 %vm58_vm0, %v2140_v8  ;;  %v1322_v9 = vrot.slane %v1318_v5, %v2157_v25  ;;  %1935 = vmatpush3.bf16.msra.mxu1 %v2135_v6 }
  0xd3   :  { %1865 = vmatmul.mubr.msk.f32.vlgmr.msra.gmra.mrb[12].mxu0 %vm54_vm2, %v1674_v3  ;;  %1871 = vmatprep.subr.mxu1 %v2066_v7 }
  0xd4   :  { %vm1323_vm3 = vcmp.eq.s32.totalorder %v2160_v26, %v1322_v9  ;;  %1936 = vmatprep.subr.bf16.mxu0 %v2065_v2  ;;  %1873 = vmatprep.mubr.msk.f32.mxu1 %vm2067_vm1, %v2066_v7 }
  0xd5   :  { %v1677_v10 = vsel %vm1323_vm3, 1.0, %v2066_v7  ;;  %1938 = vmatpush3.bf16.msra.mxu0 %v2135_v6  ;;  %1882 = vmatprep.mubr.msk.f32.mxu0 %vm2067_vm1, %v2066_v7 }
  0xd6   :  { %1872 = vmatpush3.msk.msra.mxu1 %vm58_vm0, %v2140_v8  ;;  %1880 = vmatprep.subr.mxu0 %v2066_v7  ;;  %v1522_v11 = vpop.permute.xlu1 %1521 }
  0xd7   :  { %1874 = vmatmul.mubr.msk.f32.vlgmr.msra.gmra.mrb[12].mxu1 %vm54_vm2, %v1677_v10  ;;  %1939 = vmatprep.subr.bf16.mxu1 %v2065_v2  ;;  %v1526_v13 = vrot.slane %v1522_v11, %v2157_v25  ;;  %v2082_v2 = vmov 1966171168  }
  0xd8   :  { %1941 = vmatpush3.bf16.msra.mxu1 %v2135_v6  ;;  %1891 = vmatprep.mubr.msk.f32.mxu1 %vm2067_vm1, %v2066_v7  ;;  %v222_v6 = vunpack.c.l.s4 %v2082_v2  ;;  %vm2323_vm1 = vcmp.lt.s32.totalorder %v42_v23, 32 }
  0xd9   :  { %vm1527_vm5 = vcmp.eq.s32.totalorder %v2160_v26, %v1526_v13  ;;  %1881 = vmatpush3.msk.msra.mxu0 %vm58_vm0, %v2140_v8  ;;  %1889 = vmatprep.subr.mxu1 %v2066_v7 }
  0xda   :  { %v1683_v14 = vsel %vm1527_vm5, 1.0, %v2066_v7  ;;  %1883 = vmatmul.mubr.msk.f32.vlgmr.msra.gmra.mrb[14].mxu0 %vm54_vm2, %v1680_v12  ;;  %v223_v15 = vunpack.c.0.s8 %v222_v6 }
  0xdc   :  { %1890 = vmatpush3.msk.msra.mxu1 %vm58_vm0, %v2140_v8  ;;  %v2330_v18 = vsub.s32 %v223_v15, %v2154_v24  ;;  %vm238_vm0 = vcmp.ge.s32.totalorder %v42_v23, 32 }
  0xdd   :  { %1892 = vmatmul.mubr.msk.f32.vlgmr.msra.gmra.mrb[14].mxu1 %vm54_vm2, %v1683_v14  ;;  %vm239_vm2 = vcmp.lt.s32.totalorder %v42_v23, 64 }
  0xde   :  { %vm2376_vm6 = vmand %vm238_vm0, %vm239_vm2 }
 0x181   :  { %v128_v17 = vpop.f32.mrb[0].mxu0 }
 0x182   :  { %136 = vst.msk [vmem:[#allocation7] sm:$0x1] %vm2323_vm1, %v128_v17  ;;  %v1758_v7 = vpop.f32.mrb[1].mxu0 }
 0x186   :  { %v216_v19 = vpop.f32.mrb[0].mxu1 }
 0x187   :  { %v227_v8 = vrot.slane %v216_v19, %v2330_v18  ;;  %v321_v20 = vpop.f32.mrb[2].mxu0  ;;  %v1767_v21 = vpop.f32.mrb[1].mxu1 }
 0x188   :  { %v332_v22 = vrot.slane %v321_v20, %v2330_v18  ;;  %v1776_v25 = vpop.f32.mrb[3].mxu0 }
 0x189   :  { %v234_v26 = vrot.slane %v227_v8, %v2330_v18 }
 0x18a   :  { %v339_v27 = vrot.slane %v332_v22, %v2330_v18 }
 0x18b   :  { %235 = vrot.lane.b32.xlu1 %v234_v26, %s2083_s1 }
 0x18c   :  { %v426_v28 = vpop.f32.mrb[2].mxu1 }
 0x18d   :  { %v437_v29 = vrot.slane %v426_v28, %v2330_v18  ;;  %v1785_v24 = vpop.f32.mrb[3].mxu1 }
 0x18e   :  { %v531_v30 = vpop.f32.mrb[4].mxu0 }
 0x18f   :  { %v444_v31 = vrot.slane %v437_v29, %v2330_v18  ;;  %535 = vst.msk [vmem:[#allocation7 + $0x1] sm:$0x1] %vm2323_vm1, %v531_v30  ;;  %v1794_v32 = vpop.f32.mrb[5].mxu0  ;;  %340 = vrot.lane.b32.xlu1 %v339_v27, %s2084_s7 }
 0x192   :  { %v615_v33 = vpop.f32.mrb[4].mxu1 }
 0x193   :  { %v626_v34 = vrot.slane %v615_v33, %v2330_v18  ;;  %v1803_v35 = vpop.f32.mrb[5].mxu1  ;;  %445 = vrot.lane.b32.xlu1 %v444_v31, %s2085_s8 }
 0x194   :  { %v717_v36 = vpop.f32.mrb[6].mxu0 }
 0x195   :  { %v633_v37 = vrot.slane %v626_v34, %v2330_v18  ;;  %v728_v38 = vrot.slane %v717_v36, %v2330_v18  ;;  %v1812_v39 = vpop.f32.mrb[7].mxu0 }
 0x197   :  { %v735_v40 = vrot.slane %v728_v38, %v2330_v18  ;;  %634 = vrot.lane.b32.xlu0 %v633_v37, %s2083_s1 }
 0x198   :  { %v819_v41 = vpop.f32.mrb[6].mxu1 }
 0x199   :  { %v830_v42 = vrot.slane %v819_v41, %v2330_v18  ;;  %v1821_v43 = vpop.f32.mrb[7].mxu1 }
 0x19a   :  { %v921_v44 = vpop.f32.mrb[8].mxu0 }
 0x19b   :  { %v837_v45 = vrot.slane %v830_v42, %v2330_v18  ;;  %736 = vrot.lane.b32.xlu0 %v735_v40, %s2084_s7  ;;  %925 = vst.msk [vmem:[#allocation7 + $0x2] sm:$0x1] %vm2323_vm1, %v921_v44  ;;  %v1830_v46 = vpop.f32.mrb[9].mxu0 }
 0x19e   :  { %v1005_v47 = vpop.f32.mrb[8].mxu1 }
 0x19f   :  { %v1016_v48 = vrot.slane %v1005_v47, %v2330_v18  ;;  %838 = vrot.lane.b32.xlu0 %v837_v45, %s2085_s8  ;;  %v1839_v49 = vpop.f32.mrb[9].mxu1 }
 0x1a0   :  { %v1107_v50 = vpop.f32.mrb[10].mxu0 }
 0x1a1   :  { %v1023_v51 = vrot.slane %v1016_v48, %v2330_v18  ;;  %v1118_v52 = vrot.slane %v1107_v50, %v2330_v18  ;;  %v1848_v53 = vpop.f32.mrb[11].mxu0 }
 0x1a3   :  { %v1125_v54 = vrot.slane %v1118_v52, %v2330_v18  ;;  %1024 = vrot.lane.b32.xlu1 %v1023_v51, %s2083_s1 }
 0x1a4   :  { %v1209_v55 = vpop.f32.mrb[10].mxu1 }
 0x1a5   :  { %v1220_v56 = vrot.slane %v1209_v55, %v2330_v18  ;;  %v1857_v57 = vpop.f32.mrb[11].mxu1 }
 0x1a6   :  { %v1311_v58 = vpop.f32.mrb[12].mxu0 }
 0x1a7   :  { %v1227_v59 = vrot.slane %v1220_v56, %v2330_v18  ;;  %1315 = vst.msk [vmem:[#allocation7 + $0x3] sm:$0x1] %vm2323_vm1, %v1311_v58  ;;  %v1866_v60 = vpop.f32.mrb[13].mxu0  ;;  %1126 = vrot.lane.b32.xlu1 %v1125_v54, %s2084_s7 }
 0x1aa   :  { %v1395_v61 = vpop.f32.mrb[12].mxu1 }
 0x1ab   :  { %v1406_v62 = vrot.slane %v1395_v61, %v2330_v18  ;;  %1228 = vrot.lane.b32.xlu1 %v1227_v59, %s2085_s8  ;;  %v1875_v63 = vpop.f32.mrb[13].mxu1 }
 0x1ad   :  { %v1413_v0 = vrot.slane %v1406_v62, %v2330_v18  ;;  %v1497_v1 = vpop.f32.mrb[14].mxu0 }
 0x1ae   :  { %v1508_v3 = vrot.slane %v1497_v1, %v2330_v18  ;;  %v1884_v4 = vpop.f32.mrb[15].mxu0 }
 0x1af   :  { %1414 = vrot.lane.b32.xlu0 %v1413_v0, %s2083_s1 }
 0x1b0   :  { %v1515_v5 = vrot.slane %v1508_v3, %v2330_v18  ;;  %v1599_v9 = vpop.f32.mrb[14].mxu1 }
 0x1b1   :  { %v1610_v10 = vrot.slane %v1599_v9, %v2330_v18  ;;  %v1893_v11 = vpop.f32.mrb[15].mxu1 }
 0x1b3   :  { %v1617_v12 = vrot.slane %v1610_v10, %v2330_v18  ;;  %1516 = vrot.lane.b32.xlu0 %v1515_v5, %s2084_s7 }
 0x1b7   :  { %1618 = vrot.lane.b32.xlu0 %v1617_v12, %s2085_s8 }
 0x1fd   :  { %v236_v14 = vpop.permute.xlu1 %235 }
 0x1fe   :  { %241 = vst.msk [vmem:[#allocation7] sm:$0x1] %vm2376_vm6, %v236_v14 }
 0x201   :  { %v341_v6 = vpop.permute.xlu1 %340 }
 0x202   :  { %346 = vst.msk [vmem:[#allocation7] sm:$0x1] %vm2384_vm9, %v341_v6 }
 0x205   :  { %v446_v16 = vpop.permute.xlu1 %445 }
 0x206   :  { %451 = vst.msk [vmem:[#allocation7] sm:$0x1] %vm2392_vm12, %v446_v16 }
 0x209   :  { %v635_v17 = vpop.permute.xlu0 %634 }
 0x20a   :  { %637 = vst.msk [vmem:[#allocation7 + $0x1] sm:$0x1] %vm2376_vm6, %v635_v17 }
 0x20d   :  { %v737_v7 = vpop.permute.xlu0 %736 }
 0x20e   :  { %739 = vst.msk [vmem:[#allocation7 + $0x1] sm:$0x1] %vm2384_vm9, %v737_v7 }
 0x211   :  { %v839_v23 = vpop.permute.xlu0 %838 }
 0x212   :  { %841 = vst.msk [vmem:[#allocation7 + $0x1] sm:$0x1] %vm2392_vm12, %v839_v23 }
 0x215   :  { %v1025_v18 = vpop.permute.xlu1 %1024 }
 0x216   :  { %1027 = vst.msk [vmem:[#allocation7 + $0x2] sm:$0x1] %vm2376_vm6, %v1025_v18 }
 0x219   :  { %v1127_v19 = vpop.permute.xlu1 %1126 }
 0x21a   :  { %1129 = vst.msk [vmem:[#allocation7 + $0x2] sm:$0x1] %vm2384_vm9, %v1127_v19 }
 0x21d   :  { %v1229_v8 = vpop.permute.xlu1 %1228 }
 0x21e   :  { %1231 = vst.msk [vmem:[#allocation7 + $0x2] sm:$0x1] %vm2392_vm12, %v1229_v8 }
 0x221   :  { %v1415_v20 = vpop.permute.xlu0 %1414 }
 0x222   :  { %1417 = vst.msk [vmem:[#allocation7 + $0x3] sm:$0x1] %vm2376_vm6, %v1415_v20 }
 0x225   :  { %v1517_v21 = vpop.permute.xlu0 %1516 }
 0x226   :  { %1519 = vst.msk [vmem:[#allocation7 + $0x3] sm:$0x1] %vm2384_vm9, %v1517_v21 }
 0x229   :  { %v1619_v22 = vpop.permute.xlu0 %1618 }
 0x22a   :  { %1621 = vst.msk [vmem:[#allocation7 + $0x3] sm:$0x1] %vm2392_vm12, %v1619_v22 }
 0x22b   :  { %2042 = shalt.err (!%p2039_p6)
}
 0x22c   :  { %s2043_s14 = scalar_lea.hbm %s2430_s2, 64 }
 0x22d   :  { %p2044_p7 = scmp.ne.s32.totalorder %s2430_s2, %s2043_s14  ;;  %p2047_p8 = scmp.lt.u32.totalorder %s2043_s14, %s2430_s2 }
 0x22f   :  { %p2049_p9 = pnand %p2047_p8, %p2044_p7 }
 0x231   :  { %2052 = shalt.err (!%p2049_p9)
}
 0x232   :  { %1631 = dma.vmem_to_hbm [thread:$0]  %s1629_s10, 64, %s2430_s2, [#allocation4]  }
 0x233   :  { %2057 = dma.done.wait [#allocation4], 64  }
 0x234   :  { %2058 = vsyncadd [#allocation4], 4294967232 }
 0x235   :  { %1635 = vsyncpa [#allocation3], 1 }
 0x236   :  { %1636 = vsyncpa [#allocation6], 1 }
 0x237   :  { %1637 = vsyncpa [#allocation4], 1 }

</bundles_post_ra>
